<compile_context>
chip_gen: v5e
topology: v5e:2x2
jax: 0.10.0
libtpu: 0.0.40
codegen_flags: <defaults>
</compile_context>

<pallas_src>
import functools

import jax
import jax.numpy as jnp
from jax import lax
from jax.experimental import pallas as pl
from jax.experimental.pallas import tpu as pltpu


def _round_up(x, m):
    return (x + m - 1) // m * m


def cat_scal_kernel(scal_ref, cat_ref, w_ref, b_ref, tab_ref, out_ref, *, vocab):
    """One row tile: f32 linear + C dense one-hot embedding matmuls, one store."""
    tn = scal_ref.shape[0]
    C = cat_ref.shape[1]

    # Scalar-feature linear (kept in f32): [tn, S] @ [S, E] + [1, E] bias.
    lin = jnp.dot(scal_ref[...], w_ref[...],
                  preferred_element_type=jnp.float32) + b_ref[...]

    # Per-column embedding lookup as dense one-hot matmuls against the (C, V, E)
    # table block: no block-diagonal zero padding, so MXU FLOPs and the
    # VMEM-resident table are exactly C*V*E.
    cat = cat_ref[...]                                        # [tn, C] i32
    lane = lax.broadcasted_iota(jnp.int32, (tn, vocab), 1)    # [tn, V]
    parts = [lin]
    for c in range(C):                 # C is small & static -> unrolled
        idx = cat[:, c:c + 1]                                 # [tn, 1]
        # Out-of-range index -> all-zero one-hot row -> zero embedding row.
        valid = (idx >= 0) & (idx < vocab)
        onehot = ((lane == idx) & valid).astype(tab_ref.dtype)   # 1 compare/column
        parts.append(jnp.dot(onehot, tab_ref[c],
                             preferred_element_type=jnp.float32))

    # Coalesce [lin | emb_0 | ... | emb_{C-1}] into one (tn, (1+C)*E) slab and
    # issue a single lane-dense store (unmasked when (1+C)*E % 128 == 0).
    out_ref[...] = jnp.concatenate(parts, axis=-1).astype(out_ref.dtype)


@functools.partial(jax.jit, static_argnames=("tile_n", "table_dtype"))
def cat_scal_embedding(scal_feat, cat_feat, w, b, tables, *,
                       tile_n=512, table_dtype=jnp.bfloat16):
    N, S = scal_feat.shape
    C = cat_feat.shape[1]
    Ct, V, E = tables.shape
    assert Ct == C
    out_dim = (1 + C) * E

    scal_feat = scal_feat.astype(jnp.float32)
    cat_feat = cat_feat.astype(jnp.int32)
    w = w.astype(jnp.float32)
    b = jnp.asarray(b).reshape(1, E).astype(jnp.float32)
    tables = tables.astype(table_dtype)        # exact under a 0/1 one-hot matmul
    tab_bytes = tables.dtype.itemsize

    # ---- Row-tile selection --------------------------------------------------
    #  (a) no larger than the (8-rounded) problem,
    #  (b) >= 2 grid steps when N > 8 so the "parallel" axis shards across both
    #      v7x TensorCores (no effect on 1-TC v5e/v6e),
    #  (c) fits a VMEM budget conservative for v7x (64 MiB physical, 32 MiB
    #      scoped default; v5e scoped default is 16 MiB).
    tile_n = min(tile_n, _round_up(N, 8))
    if N > 8:
        tile_n = min(tile_n, _round_up(pl.cdiv(N, 2), 8))

    def vmem_bytes(tn):
        act = tn * (V * tab_bytes              # per-column one-hot tile
                    + 2 * out_dim * 4          # double-buffered output block
                    + out_dim * 4              # coalesced result slab
                    + 2 * (S + C) * 4)         # double-buffered input blocks
        wgt = 2 * ((S * E + E) * 4 + C * V * E * tab_bytes)   # auto double-buffered
        return act + wgt

    VMEM_BUDGET = 20 * 1024 * 1024
    while tile_n > 8 and vmem_bytes(tile_n) > VMEM_BUDGET:
        tile_n = _round_up(tile_n // 2, 8)

    grid = (pl.cdiv(N, tile_n),)     # ragged last block; no padding, no out[:N]

    est = vmem_bytes(tile_n)
    compiler_params = pltpu.CompilerParams(
        dimension_semantics=("parallel",),     # megacore row split on v7x
        vmem_limit_bytes=(28 * 1024 * 1024) if est > (12 * 1024 * 1024) else None,
    )

    kernel = functools.partial(cat_scal_kernel, vocab=V)

    return pl.pallas_call(
        kernel,
        out_shape=jax.ShapeDtypeStruct((N, out_dim), jnp.float32),
        grid_spec=pltpu.PrefetchScalarGridSpec(
            num_scalar_prefetch=0,
            grid=grid,
            in_specs=[
                pl.BlockSpec((tile_n, S), lambda i: (i, 0)),     # scal rows
                pl.BlockSpec((tile_n, C), lambda i: (i, 0)),     # cat rows
                pl.BlockSpec((S, E), lambda i: (0, 0)),          # linear weight
                pl.BlockSpec((1, E), lambda i: (0, 0)),          # bias
                pl.BlockSpec((C, V, E), lambda i: (0, 0, 0)),    # dense tables
            ],
            out_specs=pl.BlockSpec((tile_n, out_dim), lambda i: (i, 0)),
        ),
        compiler_params=compiler_params,
    )(scal_feat, cat_feat, w, b, tables)


def reference(scal_feat, cat_feat, w, b, tables, table_dtype=jnp.bfloat16):
    """Pure-JAX reference: Linear(scal) ++ per-column embedding gathers."""
    lin = (scal_feat.astype(jnp.float32) @ w.astype(jnp.float32)
           + jnp.asarray(b).reshape(1, -1).astype(jnp.float32))
    tab = tables.astype(table_dtype).astype(jnp.float32)
    embs = [tab[c][cat_feat[:, c]] for c in range(cat_feat.shape[1])]
    return jnp.concatenate([lin] + embs, axis=-1)


if __name__ == "__main__":
    # Small deterministic shapes consistent with the forward.
    N = 16          # number of graph nodes in the batch
    S = 4           # number of scalar features
    C = 3           # number of categorical feature columns
    V = 16          # vocab size per categorical column
    E = 32          # embed_size

    key = jax.random.PRNGKey(0)
    k_scal, k_cat, k_w, k_b, k_tab = jax.random.split(key, 5)

    scal_feat = jax.random.normal(k_scal, (N, S), dtype=jnp.float32)
    cat_feat = jax.random.randint(k_cat, (N, C), 0, V, dtype=jnp.int32)

    # Deterministic "LazyLinear" / "LazyEmbedding" parameters.
    w = jax.random.normal(k_w, (S, E), dtype=jnp.float32) / jnp.sqrt(S)
    b = jax.random.normal(k_b, (1, E), dtype=jnp.float32) * 0.01
    tables = jax.random.normal(k_tab, (C, V, E), dtype=jnp.float32)

    # Default path: bf16 tables, N a multiple of the row tile.
    out = jax.block_until_ready(cat_scal_embedding(scal_feat, cat_feat, w, b, tables))
    ref = reference(scal_feat, cat_feat, w, b, tables)
    assert out.shape == (N, (1 + C) * E)
    assert jnp.allclose(out, ref, atol=1e-5, rtol=1e-5), "mismatch (bf16 tables)"

    # Ragged last block (N not a multiple of the row tile), no host-side padding.
    N2 = 13
    out2 = jax.block_until_ready(
        cat_scal_embedding(scal_feat[:N2], cat_feat[:N2], w, b, tables))
    ref2 = reference(scal_feat[:N2], cat_feat[:N2], w, b, tables)
    assert out2.shape == (N2, (1 + C) * E)
    assert jnp.allclose(out2, ref2, atol=1e-5, rtol=1e-5), "mismatch (ragged tail)"

    # Full-f32 tables path (exact original-module precision).
    out3 = jax.block_until_ready(
        cat_scal_embedding(scal_feat, cat_feat, w, b, tables, table_dtype=jnp.float32))
    ref3 = reference(scal_feat, cat_feat, w, b, tables, table_dtype=jnp.float32)
    assert jnp.allclose(out3, ref3, atol=1e-5, rtol=1e-5), "mismatch (f32 tables)"

    print("KERNEL_OK")
</pallas_src>

<mosaic_0001>
module attributes {stable_mosaic.version = 11 : i64} {
  func.func @cat_scal_kernel(%arg0: i32, %arg1: memref<8x4xf32, #tpu.memory_space<vmem>>, %arg2: memref<8x3xi32, #tpu.memory_space<vmem>>, %arg3: memref<4x32xf32, #tpu.memory_space<vmem>>, %arg4: memref<1x32xf32, #tpu.memory_space<vmem>>, %arg5: memref<3x16x32xbf16, #tpu.memory_space<vmem>>, %arg6: memref<8x128xf32, #tpu.memory_space<vmem>>) attributes {dimension_semantics = [#tpu.dimension_semantics<parallel>], iteration_bounds = array<i64: 2>, scalar_prefetch = 0 : i64, scratch_operands = 0 : i64, tpu.core_type = #tpu.core_type<tc>, window_params = [{transform_indices = @transform_0, window_bounds = array<i64: 8, 4>}, {transform_indices = @transform_1, window_bounds = array<i64: 8, 3>}, {pipeline_mode = #tpu.pipeline_mode<synchronous>, transform_indices = @transform_2, window_bounds = array<i64: 4, 32>}, {pipeline_mode = #tpu.pipeline_mode<synchronous>, transform_indices = @transform_3, window_bounds = array<i64: 1, 32>}, {pipeline_mode = #tpu.pipeline_mode<synchronous>, transform_indices = @transform_4, window_bounds = array<i64: 3, 16, 32>}, {transform_indices = @transform_5, window_bounds = array<i64: 8, 128>}]} {
    %c0 = arith.constant 0 : index
    %c0_0 = arith.constant 0 : index
    %0 = vector.load %arg1[%c0, %c0_0] : memref<8x4xf32, #tpu.memory_space<vmem>>, vector<8x4xf32>
    %c0_1 = arith.constant 0 : index
    %c0_2 = arith.constant 0 : index
    %1 = vector.load %arg3[%c0_1, %c0_2] : memref<4x32xf32, #tpu.memory_space<vmem>>, vector<4x32xf32>
    %cst = arith.constant dense<0.000000e+00> : vector<8x32xf32>
    %2 = tpu.matmul %0, %1, %cst {dimension_numbers = #tpu.dot_dimension_numbers<[1], [0], [0], [1], [0, 0, 1, 1], [], []>} : vector<8x4xf32>, vector<4x32xf32>, vector<8x32xf32> -> vector<8x32xf32>
    %c0_3 = arith.constant 0 : index
    %c0_4 = arith.constant 0 : index
    %3 = vector.load %arg4[%c0_3, %c0_4] : memref<1x32xf32, #tpu.memory_space<vmem>>, vector<1x32xf32>
    %4 = vector.broadcast %3 : vector<1x32xf32> to vector<8x32xf32>
    %5 = arith.addf %2, %4 : vector<8x32xf32>
    %c0_5 = arith.constant 0 : index
    %c0_6 = arith.constant 0 : index
    %6 = vector.load %arg2[%c0_5, %c0_6] : memref<8x3xi32, #tpu.memory_space<vmem>>, vector<8x3xi32>
    %7 = tpu.iota {dimensions = array<i32: 1>} : vector<8x16xi32>
    %8 = vector.extract_strided_slice %6 {offsets = [0, 0], sizes = [8, 1], strides = [1, 1]} : vector<8x3xi32> to vector<8x1xi32>
    %c0_i32 = arith.constant 0 : i32
    %9 = vector.broadcast %c0_i32 : i32 to vector<8x1xi32>
    %10 = arith.cmpi sge, %8, %9 : vector<8x1xi32>
    %c16_i32 = arith.constant 16 : i32
    %11 = vector.broadcast %c16_i32 : i32 to vector<8x1xi32>
    %12 = arith.cmpi slt, %8, %11 : vector<8x1xi32>
    %13 = arith.andi %10, %12 : vector<8x1xi1>
    %14 = vector.broadcast %8 : vector<8x1xi32> to vector<8x16xi32>
    %15 = arith.cmpi eq, %7, %14 : vector<8x16xi32>
    %16 = vector.broadcast %13 : vector<8x1xi1> to vector<8x16xi1>
    %17 = arith.andi %15, %16 : vector<8x16xi1>
    %18 = arith.extui %17 : vector<8x16xi1> to vector<8x16xi32>
    %19 = arith.sitofp %18 : vector<8x16xi32> to vector<8x16xf32>
    %20 = arith.truncf %19 : vector<8x16xf32> to vector<8x16xbf16>
    %c0_7 = arith.constant 0 : index
    %c0_8 = arith.constant 0 : index
    %c0_9 = arith.constant 0 : index
    %21 = vector.load %arg5[%c0_7, %c0_8, %c0_9] : memref<3x16x32xbf16, #tpu.memory_space<vmem>>, vector<1x16x32xbf16>
    %22 = vector.shape_cast %21 : vector<1x16x32xbf16> to vector<16x32xbf16>
    %cst_10 = arith.constant dense<0.000000e+00> : vector<8x32xf32>
    %23 = tpu.matmul %20, %22, %cst_10 {dimension_numbers = #tpu.dot_dimension_numbers<[1], [0], [0], [1], [0, 0, 1, 1], [], []>} : vector<8x16xbf16>, vector<16x32xbf16>, vector<8x32xf32> -> vector<8x32xf32>
    %24 = vector.extract_strided_slice %6 {offsets = [0, 1], sizes = [8, 1], strides = [1, 1]} : vector<8x3xi32> to vector<8x1xi32>
    %c0_i32_11 = arith.constant 0 : i32
    %25 = vector.broadcast %c0_i32_11 : i32 to vector<8x1xi32>
    %26 = arith.cmpi sge, %24, %25 : vector<8x1xi32>
    %c16_i32_12 = arith.constant 16 : i32
    %27 = vector.broadcast %c16_i32_12 : i32 to vector<8x1xi32>
    %28 = arith.cmpi slt, %24, %27 : vector<8x1xi32>
    %29 = arith.andi %26, %28 : vector<8x1xi1>
    %30 = vector.broadcast %24 : vector<8x1xi32> to vector<8x16xi32>
    %31 = arith.cmpi eq, %7, %30 : vector<8x16xi32>
    %32 = vector.broadcast %29 : vector<8x1xi1> to vector<8x16xi1>
    %33 = arith.andi %31, %32 : vector<8x16xi1>
    %34 = arith.extui %33 : vector<8x16xi1> to vector<8x16xi32>
    %35 = arith.sitofp %34 : vector<8x16xi32> to vector<8x16xf32>
    %36 = arith.truncf %35 : vector<8x16xf32> to vector<8x16xbf16>
    %c1 = arith.constant 1 : index
    %c0_13 = arith.constant 0 : index
    %c0_14 = arith.constant 0 : index
    %37 = vector.load %arg5[%c1, %c0_13, %c0_14] : memref<3x16x32xbf16, #tpu.memory_space<vmem>>, vector<1x16x32xbf16>
    %38 = vector.shape_cast %37 : vector<1x16x32xbf16> to vector<16x32xbf16>
    %cst_15 = arith.constant dense<0.000000e+00> : vector<8x32xf32>
    %39 = tpu.matmul %36, %38, %cst_15 {dimension_numbers = #tpu.dot_dimension_numbers<[1], [0], [0], [1], [0, 0, 1, 1], [], []>} : vector<8x16xbf16>, vector<16x32xbf16>, vector<8x32xf32> -> vector<8x32xf32>
    %40 = vector.extract_strided_slice %6 {offsets = [0, 2], sizes = [8, 1], strides = [1, 1]} : vector<8x3xi32> to vector<8x1xi32>
    %c0_i32_16 = arith.constant 0 : i32
    %41 = vector.broadcast %c0_i32_16 : i32 to vector<8x1xi32>
    %42 = arith.cmpi sge, %40, %41 : vector<8x1xi32>
    %c16_i32_17 = arith.constant 16 : i32
    %43 = vector.broadcast %c16_i32_17 : i32 to vector<8x1xi32>
    %44 = arith.cmpi slt, %40, %43 : vector<8x1xi32>
    %45 = arith.andi %42, %44 : vector<8x1xi1>
    %46 = vector.broadcast %40 : vector<8x1xi32> to vector<8x16xi32>
    %47 = arith.cmpi eq, %7, %46 : vector<8x16xi32>
    %48 = vector.broadcast %45 : vector<8x1xi1> to vector<8x16xi1>
    %49 = arith.andi %47, %48 : vector<8x16xi1>
    %50 = arith.extui %49 : vector<8x16xi1> to vector<8x16xi32>
    %51 = arith.sitofp %50 : vector<8x16xi32> to vector<8x16xf32>
    %52 = arith.truncf %51 : vector<8x16xf32> to vector<8x16xbf16>
    %c2 = arith.constant 2 : index
    %c0_18 = arith.constant 0 : index
    %c0_19 = arith.constant 0 : index
    %53 = vector.load %arg5[%c2, %c0_18, %c0_19] : memref<3x16x32xbf16, #tpu.memory_space<vmem>>, vector<1x16x32xbf16>
    %54 = vector.shape_cast %53 : vector<1x16x32xbf16> to vector<16x32xbf16>
    %cst_20 = arith.constant dense<0.000000e+00> : vector<8x32xf32>
    %55 = tpu.matmul %52, %54, %cst_20 {dimension_numbers = #tpu.dot_dimension_numbers<[1], [0], [0], [1], [0, 0, 1, 1], [], []>} : vector<8x16xbf16>, vector<16x32xbf16>, vector<8x32xf32> -> vector<8x32xf32>
    %56 = tpu.concatenate %5, %23, %39, %55 in 1 : vector<8x32xf32>, vector<8x32xf32>, vector<8x32xf32>, vector<8x32xf32> -> vector<8x128xf32>
    %c0_21 = arith.constant 0 : index
    %c0_22 = arith.constant 0 : index
    %57 = vector.load %arg6[%c0_21, %c0_22] : memref<8x128xf32, #tpu.memory_space<vmem>>, vector<8x128xf32>
    tpu.vector_store %arg6[%c0_21, %c0_22], %56 {strides = array<i32>} : memref<8x128xf32, #tpu.memory_space<vmem>>, vector<8x128xf32>,
    return
  }
  func.func @transform_0(%arg0: i32) -> (i32, i32) {
    %c0_i32 = arith.constant 0 : i32
    %c0_i32_0 = arith.constant 0 : i32
    return %arg0, %c0_i32 : i32, i32
  }
  func.func @transform_1(%arg0: i32) -> (i32, i32) {
    %c0_i32 = arith.constant 0 : i32
    %c0_i32_0 = arith.constant 0 : i32
    return %arg0, %c0_i32 : i32, i32
  }
  func.func @transform_2(%arg0: i32) -> (i32, i32) {
    %c0_i32 = arith.constant 0 : i32
    %c0_i32_0 = arith.constant 0 : i32
    %c0_i32_1 = arith.constant 0 : i32
    return %c0_i32, %c0_i32_0 : i32, i32
  }
  func.func @transform_3(%arg0: i32) -> (i32, i32) {
    %c0_i32 = arith.constant 0 : i32
    %c0_i32_0 = arith.constant 0 : i32
    %c0_i32_1 = arith.constant 0 : i32
    return %c0_i32, %c0_i32_0 : i32, i32
  }
  func.func @transform_4(%arg0: i32) -> (i32, i32, i32) {
    %c0_i32 = arith.constant 0 : i32
    %c0_i32_0 = arith.constant 0 : i32
    %c0_i32_1 = arith.constant 0 : i32
    %c0_i32_2 = arith.constant 0 : i32
    return %c0_i32, %c0_i32_0, %c0_i32_1 : i32, i32, i32
  }
  func.func @transform_5(%arg0: i32) -> (i32, i32) {
    %c0_i32 = arith.constant 0 : i32
    %c0_i32_0 = arith.constant 0 : i32
    return %arg0, %c0_i32 : i32, i32
  }
}

</mosaic_0001>

<bundles_post_ra>
// kernel: cat_scal_embedding.1
= control target key start
LH: loop header
LB: loop body
LE: loop exit
PB: predicated region body
PF: predicated region fallthrough
CT: control target
= control target key end

     0   :  { %10 = vsyncpa [#allocation3], 0  ;;  %s792_s0 = inlined_call_operand.vmem [shape: f32[16,4], index: 0, kind: input, shape index: {}]   ;;  %s793_s1 = inlined_call_operand.vmem [shape: s32[16,3], index: 1, kind: input, shape index: {}]   ;;  %s794_s2 = inlined_call_operand.vmem [shape: f32[4,32], index: 2, kind: input, shape index: {}]   ;;  %s795_s3 = inlined_call_operand.vmem [shape: f32[1,32], index: 3, kind: input, shape index: {}]   ;;  %s796_s4 = inlined_call_operand.vmem [shape: bf16[3,16,32], index: 4, kind: input, shape index: {}]   ;;  %s797_s5 = inlined_call_operand.hbm [shape: f32[16,128], index: 5, kind: output, shape index: {}]  }
   0x1   :  { %12 = vsyncpa [#allocation3 + $0x1], 0  ;;  %s686_s18 = smov 0   ;;  %s688_s19 = smov 0  }
   0x2   :  { %s690_s20 = smov 0   ;;  %s692_s21 = smov 0  }
   0x3 LB: > { %s707_s22 = sadd.s32 4294967295, %s647_s21   ;;  %s496_s23 = sadd.s32 4294967294, %s647_s21   ;;  %s647_s21 = sphi %s692_s21, %s803_s21   ;;  %s643_s20 = sphi %s690_s20, %s802_s20   ;;  %s639_s19 = sphi %s688_s19, %s801_s19   ;;  %s635_s18 = sphi %s686_s18, %s800_s18  }
   0x4   : > { %s711_s24 = sadd.s32 1, %s647_s21   ;;  %s140_s25 = sadd.s32 1, %s643_s20 }
   0x5   : > { %s137_s26 = ssub.s32 %s647_s21, %s711_s24  ;;  %p150_p0 = scmp.ne.s32.totalorder %s643_s20, %s639_s19 }
   0x6   : > { %p138_p1 = scmp.eq.s32.totalorder %s137_s26, 0  ;;  %p151_p2 = scmp.eq.s32.totalorder %s707_s22, 1 }
   0x7   : > { %p156_p3 = scmp.ne.s32.totalorder %s639_s19, %s635_s18  ;;  %p157_p4 = scmp.eq.s32.totalorder %s496_s23, 1 }
   0x8   : > { %s722_s27 = scalar_select %p138_p1, %s643_s20, %s140_s25  }
   0x9   : > { %p724_p5 = por %p151_p2, %p150_p0  ;;  %p728_p6 = por %p157_p4, %p156_p3 }
   0xa   : > { %p499_p7 = scmp.ge.s32.totalorder %s647_s21, 1  ;;  %p198_p8 = scmp.lt.s32.totalorder %s647_s21, 3 }
   0xc   : > { %p199_p9 = pnand %p499_p7, %p198_p8 }
   0xd   : > { %p229_p10 = scmp.lt.s32.totalorder (!%p199_p9), %s707_s22, 1  ;;  %s655_s7 = smov (!%p199_p9), 96  }
   0xe   : > { %202 = sbr.rel (%p199_p9) target bundleno = 404 (0x194), region = 40  ;;  %s226_s8 = sand.u32 (!%p199_p9), 1, %s639_s19  }
   0xf   : > { %s500_s11 = sshll.u32 (!%p199_p9), %s226_s8, 3  ;;  %s528_s12 = sshll.u32 (!%p199_p9), %s707_s22, 3 }
  0x10   : > { %s420_s15 = scalar_lea.hbm (!%p199_p9), %s797_s5, %s528_s12 }
  0x11   : > { %s424_s23 = sshll.u32 (!%p199_p9), %s420_s15, 4  ;;  %s425_s23 = int_to_ptr.hbm [resolvable:$true] %s424_s23 }
  0x12   : > { %s599_s25 = sshra.s32 (!%p199_p9), %s425_s23, 4  ;;  %s600_s25 = int_to_ptr.hbm [resolvable:$true] %s599_s25 }
  0x13   : > { %v649_v0 = vmov 1   ;;  %v650_v1 = vmov 2   ;;  %s230_s30 = scalar_select %p229_p10, %s707_s22, 1  ;;  %v651_v2 = vmov 0   ;;  %v531_v5 = vld [vmem:[%s796_s4] sm:$0xff]  ;;  %v273_v6 = vlaneseq  ;;  %v532_v8 = vld [vmem:[%s796_s4 + $0x8] sm:$0xff] }
  0x14   : > { %580 = vset.pattern.permute.xlu0 %v649_v0  ;;  %581 = vset.pattern.permute.xlu1 %v650_v1  ;;  %v533_v10 = vld [vmem:[%s796_s4 + $0x10] sm:$0xff]  ;;  %v239_v11 = vld [vmem:[%s794_s2] sm:$0xf]  ;;  %vm248_vm3 = vcmask 1043456   ;;  %vm244_vm4 = vcmask 31744   ;;  %v652_v14 = vmov 0.0   ;;  %p606_p0 = scmp.lt.s32.totalorder %s600_s25, %s797_s5 }
  0x15   : > { %582 = vset.pattern.permute.xlu2 %v651_v2  ;;  %s501_s6 = sshll.u32 %s230_s30, 3  ;;  %310 = vmatpush.bf16.msra.mxu1 %v531_v5  ;;  %v274_v9 = vand.u32 127, %v273_v6  ;;  %vm299_vm8 = vcmask 130048   ;;  %s653_s30 = smov 32   ;;  %v584_v31 = vld [vmem:[%s795_s3] ss:$0 sm:$0xff] }
  0x16   : > { %s236_s9 = scalar_lea.vmem %s793_s1, %s501_s6  ;;  %347 = vmatpush.bf16.msra.mxu2 %v532_v8  ;;  %s232_s16 = scalar_lea.vmem %s792_s0, %s501_s6  ;;  %384 = vmatpush.bf16.msra.mxu3 %v533_v10  ;;  %vm402_vm15 = vcmask 261120  }
  0x17   : > { %v272_v3 = vld [vmem:[%s236_s9] sm:$0xff]  ;;  %503 = vmatpush.msk.msra.mxu0 %vm248_vm3, %v239_v11  ;;  %s654_s6 = smov 64   ;;  %s410_s22 = scalar_lea.sflag [#allocation3], %s226_s8 }
  0x18   : > { %317 = vperm.xlu0 %580, %v272_v3   ;;  %vm275_vm0 = vcmp.ge.s32.totalorder %v272_v3, 0  ;;  %vm276_vm1 = vcmp.lt.s32.totalorder %v272_v3, 16  ;;  %354 = vperm.xlu1 %581, %v272_v3   ;;  %v238_v12 = vld [vmem:[%s232_s16] sm:$0xff]  ;;  %s228_s16 = scalar_lea.vmem [#allocation2], %s500_s11  ;;  %s601_s26 = scalar_lea.hbm %s600_s25, 8 }
  0x19   : > { %279 = vperm.xlu2 %582, %v272_v3   ;;  %vm277_vm2 = vmand %vm275_vm0, %vm276_vm1  ;;  %504 = vmatmul.msk.f32.vlgmr.msra.gmra.mxu0 %vm244_vm4, %v238_v12  ;;  %vm404_vm0 = vcmask 523264   ;;  %s422_s17 = sshll.u32 %s228_s16, 4  ;;  %vm406_vm1 = vcmask 785408   ;;  %p602_p11 = scmp.ne.s32.totalorder %s600_s25, %s601_s26  ;;  %s423_s17 = int_to_ptr.vmem [resolvable:$true] %s422_s17 }
  0x1a   : > { %v282_v4 = vsel %vm277_vm2, 1, %v651_v2 }
  0x1b   : > { %p603_p12 = pnand %p602_p11, %p724_p5 }
  0x1d   : > { %p604_p13 = pneg %p603_p12 }
  0x20   : > { %321 = vperm.xlu0 %580, %v282_v4   ;;  %358 = vperm.xlu1 %581, %v282_v4  }
  0x21   : > { %284 = vperm.xlu2 %582, %v282_v4  }
  0x28   : > { %583 = vset.pattern.permute.xlu0 %v650_v1 }
  0x73   : > { %v280_v7 = vpop.permute.xlu2 %279 }
  0x74   : > { %vm281_vm5 = vcmp.eq.s32.totalorder %v274_v9, %v280_v7 }
  0x7b   : > { %v285_v13 = vpop.permute.xlu2 %284 }
  0x7c   : > { %vm286_vm6 = vcmp.eq.s32.totalorder %v285_v13, 1 }
  0x7d   : > { %vm287_vm7 = vmand %vm281_vm5, %vm286_vm6 }
  0x7e   : > { %v505_v15 = vsel %vm287_vm7, 1.0, %v652_v14 }
  0x7f   : > { %v290_v16 = vpack.c.bf16 %v505_v15, %v505_v15 }
  0x81   : > { %510 = vmatmul.msk.bf16.vlgmr.msra.gmra.mxu1 %vm299_vm8, %v290_v16 }
  0x8a   : > { %v318_v17 = vpop.permute.xlu0 %317  ;;  %v355_v18 = vpop.permute.xlu1 %354 }
  0x8b   : > { %vm356_vm9 = vcmp.eq.s32.totalorder %v274_v9, %v355_v18  ;;  %vm319_vm10 = vcmp.eq.s32.totalorder %v274_v9, %v318_v17 }
  0x92   : > { %v322_v19 = vpop.permute.xlu0 %321  ;;  %v359_v20 = vpop.permute.xlu1 %358 }
  0x93   : > { %vm323_vm11 = vcmp.eq.s32.totalorder %v322_v19, 1  ;;  %vm360_vm12 = vcmp.eq.s32.totalorder %v359_v20, 1 }
  0x94   : > { %vm324_vm13 = vmand %vm319_vm10, %vm323_vm11 }
  0x95   : > { %v511_v21 = vsel %vm324_vm13, 1.0, %v652_v14  ;;  %vm361_vm14 = vmand %vm356_vm9, %vm360_vm12 }
  0x96   : > { %v327_v22 = vpack.c.bf16 %v511_v21, %v511_v21  ;;  %v519_v23 = vsel %vm361_vm14, 1.0, %v652_v14  ;;  %v269_v32 = vpop.f32.mrf.mxu0 }
  0x97   : > { %v364_v24 = vpack.c.bf16 %v519_v23, %v519_v23  ;;  %v270_v33 = vadd.f32 %v584_v31, %v269_v32 }
  0x98   : > { %518 = vmatmul.msk.bf16.vlgmr.msra.gmra.mxu2 %vm299_vm8, %v327_v22 }
  0x99   : > { %526 = vmatmul.msk.bf16.vlgmr.msra.gmra.mxu3 %vm299_vm8, %v364_v24 }
  0xfe   : > { %v312_v25 = vpop.f32.mrf.mxu1 }
  0xff   : > { %391 = vrot.lane.b32.xlu0 %v312_v25, %s653_s30 }
 0x106   : > { %v314_v26 = vpop.f32.mrf.mxu1 }
 0x11b   : > { %v349_v27 = vpop.f32.mrf.mxu2 }
 0x11c   : > { %395 = vrot.lane.b32.xlu1 %v349_v27, %s654_s6  ;;  %v386_v28 = vpop.f32.mrf.mxu3 }
 0x11d   : > { %399 = vrot.lane.b32.xlu2 %v386_v28, %s655_s7  ;;  %s605_s7 = scalar_lea.hbm %s797_s5, 16 }
 0x11e   : > { %p607_p1 = scmp.lt.s32.totalorder %s605_s7, %s601_s26 }
 0x120   : > { %p608_p2 = por %p607_p1, %p606_p0 }
 0x122   : > { %p609_p3 = pnand %p608_p2, %p604_p13 }
 0x123   : > { %v351_v29 = vpop.f32.mrf.mxu2 }
 0x124   : > { %v388_v30 = vpop.f32.mrf.mxu3 }
 0x171   : > { %v392_v34 = vpop.permute.xlu0 %391 }
 0x172   : > { %v403_v35 = vsel %vm402_vm15, %v270_v33, %v392_v34 }
 0x177   : > { %v400_v37 = vpop.permute.xlu2 %399 }
 0x18e   : > { %v396_v36 = vpop.permute.xlu1 %395 }
 0x18f   : > { %v405_v38 = vsel %vm404_vm0, %v403_v35, %v396_v36 }
 0x190   : > { %v407_v39 = vsel %vm406_vm1, %v405_v38, %v400_v37 }
 0x191   : > { %408 = vst [vmem:[%s228_s16] sm:$0xff] %v407_v39 }
 0x192   : > { %612 = shalt.err (!%p609_p3)
}
 0x193   : > { %534 = dma.vmem_to_hbm [thread:$0]  (%p724_p5), %s423_s17, 128, %s425_s23, %s410_s22  }
 0x194 PF: > { %p540_p4 = scmp.ge.s32.totalorder %s647_s21, 2  ;;  %s436_s8 = sand.u32 1, %s635_s18  }
 0x195   : > { %s437_s11 = scalar_lea.sflag [#allocation3], %s436_s8 }
 0x196   : > { %p537_p7 = pnand %p540_p4, %p728_p6 }
 0x198   : > { %p538_p8 = pneg %p537_p7 }
 0x19a   : > { %630 = dma.done.wait (%p538_p8), %s437_s11, 128  }
 0x19b   : > { %632 = vsyncadd (%p538_p8), %s437_s11, 4294967168  ;;  %p15_p9 = scmp.ge.s32.totalorder %s711_s24, 4   ;;  %s800_s18 = smov %s639_s19 }
 0x19c   : > { %s801_s19 = smov %s643_s20  ;;  %s802_s20 = smov %s722_s27 }
 0x19d   : > { %s803_s21 = smov %s711_s24  ;;  %17 = sbr.rel (!%p15_p9) target bundleno = 3 (0x3), region = 80 }
 0x1a2   :  { %443 = vsyncpa [#allocation3], 1 }
 0x1a3   :  { %445 = vsyncpa [#allocation3 + $0x1], 1 }

</bundles_post_ra>
